<compile_context>
chip_gen: v5e
topology: v5e:2x2
jax: 0.10.0
libtpu: 0.0.40
codegen_flags: <defaults>
</compile_context>

<pallas_src>
import jax
import jax.numpy as jnp
from jax.experimental import pallas as pl
from jax.experimental.pallas import tpu as pltpu


def _ceil_to(x, m):
    return (x + m - 1) // m * m


def _gemm_bias_kernel(cols_ref, w_ref, b_ref, out_ref):
    # cols_ref: (tm, Kc)        lane-dense im2col row-band (possibly bf16)
    # w_ref:    (Kc, co_block)  ws-folded, flipped, flattened weights (possibly bf16)
    # b_ref:    (1, co_block)   f32 bias
    # out_ref:  (tm, co_block)  output row-band
    acc = jnp.dot(cols_ref[...], w_ref[...], preferred_element_type=jnp.float32)
    out_ref[...] = (acc + b_ref[...]).astype(out_ref.dtype)


def ws_conv_trans2d(x_nchw, weight, bias, *, gain=2, co_block=128, tm=128,
                    compute_dtype=jnp.float32):
    """Weight-scaled ConvTranspose2d forward (stride=1, padding=0, bias added post-conv).

    x_nchw: (N, Ci, H, W); weight: (Ci, Co, K, K) (PyTorch ConvTranspose2d layout); bias: (Co,).
    """
    N, Ci, H, W = x_nchw.shape
    Ci_w, Co, K, K2 = weight.shape
    assert Ci_w == Ci and K == K2
    ws = float((gain / (K * K * Ci)) ** 0.5)

    pad = K - 1
    H_out, W_out = H + K - 1, W + K - 1
    M = H_out * W_out

    ci_p = _ceil_to(Ci, 8)                 # aligned channel sub-blocks; K*K*ci_p = 128 here
    Kc = K * K * ci_p                      # lane-dense contraction dim
    co_p = _ceil_to(Co, co_block)          # lane-dense output channels (toy Co=8 -> 128;
    n_co = co_p // co_block                # acceptable waste only for toy shapes, see TODO)

    tm_eff = tm if M >= tm else _ceil_to(M, 16)
    M_p = _ceil_to(M, tm_eff)              # sublane-dense, unmasked row-band stores
    n_m = M_p // tm_eff

    out_dtype = x_nchw.dtype

    # ---- XLA glue: layout, spatial zero-pad, ws-folded flipped weights, im2col ----
    x_nhwc = jnp.transpose(x_nchw, (0, 2, 3, 1))                                   # (N,H,W,Ci)
    x_nhwc = jnp.pad(x_nhwc, ((0, 0), (pad, pad), (pad, pad), (0, ci_p - Ci)))     # halo + Ci pad
    # im2col: cols[n, y*W_out+x, (p*K+q)*ci_p + ci] = xpad[n, y+p, x+q, ci]
    taps = [x_nhwc[:, p:p + H_out, q:q + W_out, :] for p in range(K) for q in range(K)]
    cols = jnp.concatenate(taps, axis=-1).reshape(N, M, Kc)
    cols = jnp.pad(cols, ((0, 0), (0, M_p - M), (0, 0))).astype(compute_dtype)

    # flipped kernel with ws folded in: wf[p,q,ci,co] = ws * W[ci, co, K-1-p, K-1-q]
    wf = jnp.transpose(weight[:, :, ::-1, ::-1], (2, 3, 0, 1)) * ws
    wf = jnp.pad(wf, ((0, 0), (0, 0), (0, ci_p - Ci), (0, co_p - Co)))
    wmat = wf.reshape(Kc, co_p).astype(compute_dtype)

    bias_p = jnp.pad(bias, (0, co_p - Co)).reshape(1, co_p).astype(jnp.float32)

    out = pl.pallas_call(
        _gemm_bias_kernel,
        out_shape=jax.ShapeDtypeStruct((N, M_p, co_p), out_dtype),
        grid=(N, n_m, n_co),
        in_specs=[
            pl.BlockSpec((None, tm_eff, Kc), lambda n, m, j: (n, m, 0)),
            pl.BlockSpec((Kc, co_block), lambda n, m, j: (0, j)),
            pl.BlockSpec((1, co_block), lambda n, m, j: (0, j)),
        ],
        out_specs=pl.BlockSpec((None, tm_eff, co_block), lambda n, m, j: (n, m, j)),
        compiler_params=pltpu.CompilerParams(
            dimension_semantics=("parallel", "parallel", "parallel")),
    )(cols, wmat, bias_p)

    out = out[:, :M, :Co].reshape(N, H_out, W_out, Co)   # drop M / Co padding
    return jnp.transpose(out, (0, 3, 1, 2))              # back to NCHW


def _reference_forward(x, weight, bias, *, gain=2):
    """Pure-JAX reference of PyTorch ConvTranspose2d(stride=1, pad=0) scatter semantics."""
    N, Ci, H, W = x.shape
    _, Co, K, _ = weight.shape
    ws = (gain / (K * K * Ci)) ** 0.5
    xs = x * ws
    H_out, W_out = H + K - 1, W + K - 1
    out = jnp.zeros((N, Co, H_out, W_out), x.dtype)
    for p in range(K):
        for q in range(K):
            out = out.at[:, :, p:p + H, q:q + W].add(
                jnp.einsum("nchw,co->nohw", xs, weight[:, :, p, q])
            )
    return out + bias[None, :, None, None]


if __name__ == "__main__":
    in_chans, out_chans, kernel_size = 4, 8, 4
    N, H, W = 2, 16, 16

    key = jax.random.PRNGKey(0)
    k_x, k_w, k_b = jax.random.split(key, 3)
    x = jax.random.normal(k_x, (N, in_chans, H, W), dtype=jnp.float32)
    # nn.init.normal_(weight): standard normal.  The module inits bias to zeros; a small
    # non-zero bias is used here purely to exercise the bias-add path of the forward.
    weight = jax.random.normal(k_w, (in_chans, out_chans, kernel_size, kernel_size),
                               dtype=jnp.float32)
    bias = 0.1 * jax.random.normal(k_b, (out_chans,), dtype=jnp.float32)

    ref = _reference_forward(x, weight, bias, gain=2)

    # f32 path: exact-tolerance check against the reference.
    out_f32 = jax.block_until_ready(
        ws_conv_trans2d(x, weight, bias, gain=2, compute_dtype=jnp.float32))
    assert out_f32.shape == (N, out_chans, H + kernel_size - 1, W + kernel_size - 1)
    assert jnp.allclose(out_f32, ref, atol=1e-4, rtol=1e-4), "f32 Pallas output mismatch"

    # bf16-operand path (f32 accumulation): sanity check at bf16-appropriate tolerance.
    out_bf16 = jax.block_until_ready(
        ws_conv_trans2d(x, weight, bias, gain=2, compute_dtype=jnp.bfloat16))
    assert out_bf16.shape == out_f32.shape
    max_err = float(jnp.max(jnp.abs(out_bf16 - ref)))
    assert max_err < 5e-2, f"bf16 Pallas output mismatch (max abs err {max_err})"

    print("KERNEL_OK")
</pallas_src>

<mosaic_0001>
module attributes {stable_mosaic.version = 11 : i64} {
  func.func @_gemm_bias_kernel(%arg0: i32, %arg1: i32, %arg2: i32, %arg3: memref<1x128x128xf32, #tpu.memory_space<vmem>>, %arg4: memref<128x128xf32, #tpu.memory_space<vmem>>, %arg5: memref<1x128xf32, #tpu.memory_space<vmem>>, %arg6: memref<1x128x128xf32, #tpu.memory_space<vmem>>) attributes {dimension_semantics = [#tpu.dimension_semantics<parallel>, #tpu.dimension_semantics<parallel>, #tpu.dimension_semantics<parallel>], iteration_bounds = array<i64: 2, 3, 1>, scalar_prefetch = 0 : i64, scratch_operands = 0 : i64, tpu.core_type = #tpu.core_type<tc>, window_params = [{transform_indices = @transform_0, window_bounds = array<i64: 1, 128, 128>}, {transform_indices = @transform_1, window_bounds = array<i64: 128, 128>}, {transform_indices = @transform_2, window_bounds = array<i64: 1, 128>}, {transform_indices = @transform_3, window_bounds = array<i64: 1, 128, 128>}]} {
    %c0 = arith.constant 0 : index
    %c0_0 = arith.constant 0 : index
    %c0_1 = arith.constant 0 : index
    %0 = vector.load %arg3[%c0, %c0_0, %c0_1] : memref<1x128x128xf32, #tpu.memory_space<vmem>>, vector<1x128x128xf32>
    %1 = vector.shape_cast %0 : vector<1x128x128xf32> to vector<128x128xf32>
    %c0_2 = arith.constant 0 : index
    %c0_3 = arith.constant 0 : index
    %2 = vector.load %arg4[%c0_2, %c0_3] : memref<128x128xf32, #tpu.memory_space<vmem>>, vector<128x128xf32>
    %cst = arith.constant dense<0.000000e+00> : vector<128x128xf32>
    %3 = tpu.matmul %1, %2, %cst {dimension_numbers = #tpu.dot_dimension_numbers<[1], [0], [0], [1], [0, 0, 1, 1], [], []>} : vector<128x128xf32>, vector<128x128xf32>, vector<128x128xf32> -> vector<128x128xf32>
    %c0_4 = arith.constant 0 : index
    %c0_5 = arith.constant 0 : index
    %4 = vector.load %arg5[%c0_4, %c0_5] : memref<1x128xf32, #tpu.memory_space<vmem>>, vector<1x128xf32>
    %5 = vector.broadcast %4 : vector<1x128xf32> to vector<128x128xf32>
    %6 = arith.addf %3, %5 : vector<128x128xf32>
    %c0_6 = arith.constant 0 : index
    %c0_7 = arith.constant 0 : index
    %c0_8 = arith.constant 0 : index
    %7 = vector.load %arg6[%c0_6, %c0_7, %c0_8] : memref<1x128x128xf32, #tpu.memory_space<vmem>>, vector<1x128x128xf32>
    %8 = vector.shape_cast %7 : vector<1x128x128xf32> to vector<128x128xf32>
    %9 = vector.shape_cast %6 : vector<128x128xf32> to vector<1x128x128xf32>
    tpu.vector_store %arg6[%c0_6, %c0_7, %c0_8], %9 {strides = array<i32>} : memref<1x128x128xf32, #tpu.memory_space<vmem>>, vector<1x128x128xf32>,
    return
  }
  func.func @transform_0(%arg0: i32, %arg1: i32, %arg2: i32) -> (i32, i32, i32) {
    %c0_i32 = arith.constant 0 : i32
    %c0_i32_0 = arith.constant 0 : i32
    return %arg0, %arg1, %c0_i32 : i32, i32, i32
  }
  func.func @transform_1(%arg0: i32, %arg1: i32, %arg2: i32) -> (i32, i32) {
    %c0_i32 = arith.constant 0 : i32
    %c0_i32_0 = arith.constant 0 : i32
    return %c0_i32, %arg2 : i32, i32
  }
  func.func @transform_2(%arg0: i32, %arg1: i32, %arg2: i32) -> (i32, i32) {
    %c0_i32 = arith.constant 0 : i32
    %c0_i32_0 = arith.constant 0 : i32
    return %c0_i32, %arg2 : i32, i32
  }
  func.func @transform_3(%arg0: i32, %arg1: i32, %arg2: i32) -> (i32, i32, i32) {
    %c0_i32 = arith.constant 0 : i32
    return %arg0, %arg1, %arg2 : i32, i32, i32
  }
}

</mosaic_0001>

<bundles_post_ra>
// kernel: tpu_custom_call.1
= control target key start
LH: loop header
LB: loop body
LE: loop exit
PB: predicated region body
PF: predicated region fallthrough
CT: control target
= control target key end

     0   :  { %s1080_s0 = inlined_call_operand.hbm [shape: f32[2,384,128], index: 0, kind: input, shape index: {}]   ;;  %s1081_s1 = inlined_call_operand.hbm [shape: f32[128,128], index: 1, kind: input, shape index: {}]   ;;  %s1082_s2 = inlined_call_operand.vmem [shape: f32[1,128], index: 2, kind: input, shape index: {}]   ;;  %s1083_s3 = inlined_call_operand.hbm [shape: f32[2,384,128], index: 3, kind: output, shape index: {}]  }
   0x1   :  { %1092 = sst [smem:[#allocation16_spill]] %s1081_s1 }
   0x2   :  { %8 = vsyncpa [#allocation3], 0 }
   0x3   :  { %10 = vsyncpa [#allocation3 + $0x1], 0 }
   0x4   :  { %11 = vsyncpa [#allocation6], 0 }
   0x5   :  { %12 = vsyncpa [#allocation4], 0 }
   0x6   :  { %14 = vsyncpa [#allocation4 + $0x1], 0  ;;  %s863_s12 = smov 0   ;;  %s865_s13 = smov 0  }
   0x7   :  { %s867_s14 = smov 0   ;;  %s869_s15 = smov 0  }
   0x8   :  { %s871_s16 = smov 0   ;;  %s873_s17 = smov 0  }
   0x9   :  { %s875_s18 = smov 0   ;;  %s877_s19 = smov 0  }
   0xa LB: > { %1093 = sst [smem:[#allocation11_spill]] %s808_s12  ;;  %s512_s20 = sadd.s32 4294967295, %s836_s19   ;;  %s836_s19 = sphi %s877_s19, %s20_s19   ;;  %s832_s18 = sphi %s875_s18, %s1118_s18   ;;  %s828_s17 = sphi %s873_s17, %s1117_s17   ;;  %s824_s16 = sphi %s871_s16, %s1116_s16   ;;  %s820_s15 = sphi %s869_s15, %s1115_s15   ;;  %s816_s14 = sphi %s867_s14, %s1114_s14   ;;  %s812_s13 = sphi %s865_s13, %s1113_s13   ;;  %s808_s12 = sphi %s863_s12, %s1112_s12  }
   0xb   : > { %s513_s21 = sadd.s32 4294967294, %s836_s19   ;;  %p61_p0 = scmp.ne.s32.totalorder %s812_s13, %s808_s12 }
   0xc   : > { %p907_p1 = scmp.eq.s32.totalorder %s512_s20, 0  ;;  %p147_p2 = scmp.eq.s32.totalorder %s513_s21, 5 }
   0xd   : > { %p514_p4 = scmp.ge.s32.totalorder %s836_s19, 1  ;;  %p154_p6 = scmp.lt.s32.totalorder %s836_s19, 7 }
   0xe   : > { %p913_p3 = por %p907_p1, %p61_p0  ;;  %p918_p5 = por %p147_p2, %p61_p0 }
   0xf   : > { %s1098_s1 = sld [smem:[#allocation16_spill]]  ;;  %p926_p7 = pnand %p514_p4, %p154_p6 }
  0x10   : > { %s1096_s24 = scalar_select %p918_p5, 1, 0 }
  0x11   : > { %p588_p8 = pneg %p926_p7  ;;  %s838_s29 = smov [#allocation5]  }
  0x12   : > { %1097 = sst [smem:[#allocation12_spill]] %s1096_s24  ;;  %s169_s30 = sshll.u32 %s838_s29, 4  ;;  %s170_s30 = int_to_ptr.vmem [resolvable:$true] %s169_s30 }
  0x13   : > { %p589_p9 = pnand %p588_p8, %p907_p1  ;;  %s1084_s4 = smov 128  }
  0x14   : > { %s1085_s5 = smov 8   ;;  %s35_s6 = sadd.s32 1, %s828_s17 }
  0x15   : > { %s167_s27 = sshll.u32 %s1098_s1, 4  ;;  %p37_p10 = scmp.ge.s32.totalorder %s35_s6, 3  ;;  %s168_s27 = int_to_ptr.hbm [resolvable:$true] %s167_s27 }
  0x16   : > { %591 = dma.hbm_to_vmem [thread:$0]  (!%p589_p9), %s168_s27, 2048, %s170_s30, [#allocation6], %s1084_s4, %s1084_s4, %s1085_s5  }
  0x17   : > { %s39_s7 = sadd.s32 1, %s832_s18  ;;  %p141_p11 = scmp.eq.s32.totalorder %s512_s20, 5 }
  0x18   : > { %p55_p12 = scmp.ne.s32.totalorder %s816_s14, %s812_s13  ;;  %s1120_s6 = smov (%p37_p10, %s35_s6), 0 }
  0x19   : > { %1100 = sst [smem:[#allocation13_spill]] %s1120_s6  ;;  %s1122_s7 = smov (!%p37_p10, %s39_s7), %s832_s18 }
  0x1a   : > { %s48_s8 = sadd.s32 1, %s816_s14  ;;  %p56_p13 = scmp.eq.s32.totalorder %s836_s19, 0 }
  0x1b   : > { %p41_p0 = scmp.ge.s32.totalorder %s1122_s7, 2  ;;  %p946_p2 = por %p141_p11, %p55_p12 }
  0x1c   : > { %s44_s10 = ssub.s32 %s828_s17, %s1120_s6  ;;  %p952_p4 = por %p56_p13, %p55_p12 }
  0x1d   : > { %s1101_s9 = scalar_select %p946_p2, 1, 0 }
  0x1e   : > { %s1124_s7 = smov (%p41_p0, %s1122_s7), 0  ;;  %p601_p6 = scmp.lt.s32.totalorder %s836_s19, 6 }
  0x1f   : > { %1102 = sst [smem:[#allocation14_spill]] %s1101_s9  ;;  %s189_s20 = sand.u32 1, %s816_s14  }
  0x20   : > { %1104 = sst [smem:[#allocation15_spill]] %s1124_s7  ;;  %s43_s21 = ssub.s32 %s832_s18, %s1124_s7 }
  0x21   : > { %s519_s25 = sshll.u32 %s828_s17, 4  ;;  %s45_s26 = sor.u32 %s44_s10, %s43_s21 }
  0x22   : > { %s518_s27 = sshll.u32 %s189_s20, 7  ;;  %p46_p8 = scmp.eq.s32.totalorder %s45_s26, 0 }
  0x23   : > { %s578_s29 = smul.u32 48, %s832_s18  ;;  %s193_s30 = scalar_lea.vmem [#allocation2], %s518_s27 }
  0x24   : > { %s203_s4 = sshll.u32 %s193_s30, 4  ;;  %p593_p9 = pnand %p601_p6, %p952_p4  ;;  %s204_s4 = int_to_ptr.vmem [resolvable:$true] %s203_s4 }
  0x25   : > { %s965_s5 = scalar_select %p46_p8, %s816_s14, %s48_s8  }
  0x26   : > { %s198_s1 = sadd.s32 %s578_s29, %s519_s25  ;;  %s190_s10 = scalar_lea.sflag [#allocation3], %s189_s20 }
  0x27   : > { %s520_s6 = sshll.u32 %s198_s1, 3  ;;  %s1105_s21 = smov 8  }
  0x28   : > { %s200_s9 = scalar_lea.hbm %s1080_s0, %s520_s6  ;;  %s1106_s26 = smov 128  }
  0x29   : > { %s201_s7 = sshll.u32 %s200_s9, 4  ;;  %215 = sbr.rel (%p926_p7) target bundleno = 244 (0xf4), region = 32  ;;  %s202_s7 = int_to_ptr.hbm [resolvable:$true] %s201_s7 }
  0x2a   : > { %595 = dma.hbm_to_vmem [thread:$0]  (!%p593_p9), %s202_s7, 2048, %s204_s4, %s190_s10, %s1106_s26, %s1106_s26, %s1105_s21  }
  0x2b   : > { %s980_s1 = sand.u32 (!%p926_p7), 1, %s812_s13  }
  0x2c   : > { %s522_s12 = sshll.u32 (!%p926_p7), %s980_s1, 7  ;;  %s218_s24 = scalar_lea.sflag (!%p926_p7), [#allocation3], %s980_s1 }
  0x2d   : > { %s986_s6 = scalar_lea.vmem (!%p926_p7), [#allocation2], %s522_s12 }
  0x2e   : > { %795 = dma.done.wait (%p913_p3), %s218_s24, 2048  }
  0x2f   : > { %797 = vsyncadd (%p913_p3), %s218_s24, 4294965248 }
  0x30   : > { %799 = dma.done.wait (%p907_p1), [#allocation6], 2048  }
  0x31   : > { %801 = vsyncadd (%p907_p1), [#allocation6], 4294965248  ;;  %v289_v0 = vld [vmem:[#allocation5 + $0x78] sm:$0xff]  ;;  %v288_v1 = vld [vmem:[#allocation5 + $0x70] sm:$0xff]  ;;  %s1017_s28 = scalar_lea.vmem [#allocation7], %s522_s12  ;;  %s579_s4 = smul.u32 48, %s824_s16 }
  0x32   : > { %531 = vmatpush.msra.mxu2 %v289_v0  ;;  %532 = vmatpush.msra.mxu3 %v289_v0  ;;  %v287_v2 = vld [vmem:[#allocation5 + $0x68] sm:$0xff]  ;;  %v286_v3 = vld [vmem:[#allocation5 + $0x60] sm:$0xff]  ;;  %v285_v4 = vld [vmem:[#allocation5 + $0x58] sm:$0xff]  ;;  %s526_s7 = sshll.u32 %s820_s15, 4  ;;  %s391_s20 = sshll.u32 %s1017_s28, 4  ;;  %s392_s20 = int_to_ptr.vmem [resolvable:$true] %s391_s20 }
  0x33   : > { %294 = vmatpush.msra.mxu0 %v289_v0  ;;  %530 = vmatpush.msra.mxu1 %v289_v0  ;;  %v284_v5 = vld [vmem:[#allocation5 + $0x50] sm:$0xff]  ;;  %v283_v6 = vld [vmem:[#allocation5 + $0x48] sm:$0xff]  ;;  %v282_v7 = vld [vmem:[#allocation5 + $0x40] sm:$0xff]  ;;  %s388_s8 = sadd.s32 %s579_s4, %s526_s7  ;;  %s376_s29 = scalar_lea.sflag [#allocation4], %s980_s1 }
  0x34   : > { %534 = vmatpush.msra.mxu2 %v288_v1  ;;  %535 = vmatpush.msra.mxu3 %v288_v1  ;;  %v281_v8 = vld [vmem:[#allocation5 + $0x38] sm:$0xff]  ;;  %v280_v9 = vld [vmem:[#allocation5 + $0x30] sm:$0xff]  ;;  %v279_v10 = vld [vmem:[#allocation5 + $0x28] sm:$0xff]  ;;  %s527_s9 = sshll.u32 %s388_s8, 3  ;;  %s754_s12 = scalar_lea.hbm %s1083_s3, 768 }
  0x35   : > { %295 = vmatpush.msra.mxu0 %v288_v1  ;;  %533 = vmatpush.msra.mxu1 %v288_v1  ;;  %v278_v11 = vld [vmem:[#allocation5 + $0x20] sm:$0xff]  ;;  %v277_v12 = vld [vmem:[#allocation5 + $0x18] sm:$0xff]  ;;  %v276_v13 = vld [vmem:[#allocation5 + $0x10] sm:$0xff]  ;;  %s390_s11 = scalar_lea.hbm %s1083_s3, %s527_s9 }
  0x36   : > { %537 = vmatpush.msra.mxu2 %v287_v2  ;;  %538 = vmatpush.msra.mxu3 %v287_v2  ;;  %v275_v14 = vld [vmem:[#allocation5 + $0x8] sm:$0xff]  ;;  %v274_v15 = vld [vmem:[#allocation5] sm:$0xff]  ;;  %v268_v24 = vld [vmem:[%s986_s6 + $0x50] sm:$0xff]  ;;  %s393_s25 = sshll.u32 %s390_s11, 4  ;;  %s394_s25 = int_to_ptr.hbm [resolvable:$true] %s393_s25 }
  0x37   : > { %296 = vmatpush.msra.mxu0 %v287_v2  ;;  %536 = vmatpush.msra.mxu1 %v287_v2  ;;  %v266_v16 = vld [vmem:[%s986_s6 + $0x40] sm:$0xff]  ;;  %v267_v20 = vld [vmem:[%s986_s6 + $0x48] sm:$0xff]  ;;  %v272_v25 = vld [vmem:[%s986_s6 + $0x70] sm:$0xff]  ;;  %s748_s30 = sshra.s32 %s394_s25, 4  ;;  %s749_s30 = int_to_ptr.hbm [resolvable:$true] %s748_s30 }
  0x38   : > { %540 = vmatpush.msra.mxu2 %v286_v3  ;;  %541 = vmatpush.msra.mxu3 %v286_v3  ;;  %v270_v17 = vld [vmem:[%s986_s6 + $0x60] sm:$0xff]  ;;  %v271_v21 = vld [vmem:[%s986_s6 + $0x68] sm:$0xff]  ;;  %v260_v26 = vld [vmem:[%s986_s6 + $0x10] sm:$0xff]  ;;  %s750_s10 = scalar_lea.hbm %s749_s30, 128  ;;  %p755_p10 = scmp.lt.s32.totalorder %s749_s30, %s1083_s3 }
  0x39   : > { %297 = vmatpush.msra.mxu0 %v286_v3  ;;  %539 = vmatpush.msra.mxu1 %v286_v3  ;;  %v258_v18 = vld [vmem:[%s986_s6] sm:$0xff]  ;;  %v259_v22 = vld [vmem:[%s986_s6 + $0x8] sm:$0xff]  ;;  %v264_v27 = vld [vmem:[%s986_s6 + $0x30] sm:$0xff]  ;;  %p751_p1 = scmp.ne.s32.totalorder %s749_s30, %s750_s10  ;;  %p756_p11 = scmp.lt.s32.totalorder %s754_s12, %s750_s10 }
  0x3a   : > { %543 = vmatpush.msra.mxu2 %v285_v4  ;;  %544 = vmatpush.msra.mxu3 %v285_v4  ;;  %v262_v19 = vld [vmem:[%s986_s6 + $0x20] sm:$0xff]  ;;  %v263_v23 = vld [vmem:[%s986_s6 + $0x28] sm:$0xff]  ;;  %v269_v28 = vld [vmem:[%s986_s6 + $0x58] sm:$0xff] }
  0x3b   : > { %298 = vmatpush.msra.mxu0 %v285_v4  ;;  %542 = vmatpush.msra.mxu1 %v285_v4  ;;  %v273_v29 = vld [vmem:[%s986_s6 + $0x78] sm:$0xff]  ;;  %v673_v32 = vld [vmem:[%s1082_s2] ss:$0 sm:$0xff]  ;;  %p752_p3 = pnand %p751_p1, %p946_p2  ;;  %p757_p12 = por %p756_p11, %p755_p10 }
  0x3c   : > { %546 = vmatpush.msra.mxu2 %v284_v5  ;;  %547 = vmatpush.msra.mxu3 %v284_v5  ;;  %v261_v30 = vld [vmem:[%s986_s6 + $0x18] sm:$0xff] }
  0x3d   : > { %299 = vmatpush.msra.mxu0 %v284_v5  ;;  %545 = vmatpush.msra.mxu1 %v284_v5  ;;  %v265_v31 = vld [vmem:[%s986_s6 + $0x38] sm:$0xff]  ;;  %p753_p7 = pneg %p752_p3 }
  0x3e   : > { %549 = vmatpush.msra.mxu2 %v283_v6  ;;  %550 = vmatpush.msra.mxu3 %v283_v6 }
  0x3f   : > { %300 = vmatpush.msra.mxu0 %v283_v6  ;;  %548 = vmatpush.msra.mxu1 %v283_v6  ;;  %p758_p13 = pnand %p757_p12, %p753_p7 }
  0x40   : > { %552 = vmatpush.msra.mxu2 %v282_v7  ;;  %553 = vmatpush.msra.mxu3 %v282_v7 }
  0x41   : > { %301 = vmatpush.msra.mxu0 %v282_v7  ;;  %551 = vmatpush.msra.mxu1 %v282_v7 }
  0x42   : > { %555 = vmatpush.msra.mxu2 %v281_v8  ;;  %556 = vmatpush.msra.mxu3 %v281_v8 }
  0x43   : > { %302 = vmatpush.msra.mxu0 %v281_v8  ;;  %554 = vmatpush.msra.mxu1 %v281_v8 }
  0x44   : > { %558 = vmatpush.msra.mxu2 %v280_v9  ;;  %559 = vmatpush.msra.mxu3 %v280_v9 }
  0x45   : > { %303 = vmatpush.msra.mxu0 %v280_v9  ;;  %557 = vmatpush.msra.mxu1 %v280_v9 }
  0x46   : > { %561 = vmatpush.msra.mxu2 %v279_v10  ;;  %562 = vmatpush.msra.mxu3 %v279_v10 }
  0x47   : > { %304 = vmatpush.msra.mxu0 %v279_v10  ;;  %560 = vmatpush.msra.mxu1 %v279_v10 }
  0x48   : > { %564 = vmatpush.msra.mxu2 %v278_v11  ;;  %565 = vmatpush.msra.mxu3 %v278_v11 }
  0x49   : > { %305 = vmatpush.msra.mxu0 %v278_v11  ;;  %563 = vmatpush.msra.mxu1 %v278_v11 }
  0x4a   : > { %567 = vmatpush.msra.mxu2 %v277_v12  ;;  %568 = vmatpush.msra.mxu3 %v277_v12 }
  0x4b   : > { %306 = vmatpush.msra.mxu0 %v277_v12  ;;  %566 = vmatpush.msra.mxu1 %v277_v12 }
  0x4c   : > { %570 = vmatpush.msra.mxu2 %v276_v13  ;;  %571 = vmatpush.msra.mxu3 %v276_v13 }
  0x4d   : > { %307 = vmatpush.msra.mxu0 %v276_v13  ;;  %569 = vmatpush.msra.mxu1 %v276_v13 }
  0x4e   : > { %573 = vmatpush.msra.mxu2 %v275_v14  ;;  %574 = vmatpush.msra.mxu3 %v275_v14 }
  0x4f   : > { %308 = vmatpush.msra.mxu0 %v275_v14  ;;  %572 = vmatpush.msra.mxu1 %v275_v14 }
  0x50   : > { %576 = vmatpush.msra.mxu2 %v274_v15  ;;  %577 = vmatpush.msra.mxu3 %v274_v15 }
  0x51   : > { %334 = vmatmul.f32.vlgmr.msra.gmra.mxu2 %v266_v16  ;;  %346 = vmatmul.f32.vlgmr.msra.gmra.mxu3 %v270_v17 }
  0x52   : > { %309 = vmatpush.msra.mxu0 %v274_v15  ;;  %575 = vmatpush.msra.mxu1 %v274_v15 }
  0x53   : > { %310 = vmatmul.f32.vlgmr.msra.gmra.mxu0 %v258_v18  ;;  %322 = vmatmul.f32.vlgmr.msra.gmra.mxu1 %v262_v19 }
  0x59   : > { %337 = vmatmul.f32.gmra.mxu2 %v267_v20  ;;  %349 = vmatmul.f32.gmra.mxu3 %v271_v21 }
  0x5b   : > { %313 = vmatmul.f32.gmra.mxu0 %v259_v22  ;;  %325 = vmatmul.f32.gmra.mxu1 %v263_v23 }
  0x61   : > { %340 = vmatmul.f32.gmra.mxu2 %v268_v24  ;;  %352 = vmatmul.f32.gmra.mxu3 %v272_v25 }
  0x63   : > { %316 = vmatmul.f32.gmra.mxu0 %v260_v26  ;;  %328 = vmatmul.f32.gmra.mxu1 %v264_v27 }
  0x69   : > { %343 = vmatmul.f32.gmra.mxu2 %v269_v28  ;;  %355 = vmatmul.f32.gmra.mxu3 %v273_v29 }
  0x6b   : > { %319 = vmatmul.f32.gmra.mxu0 %v261_v30  ;;  %331 = vmatmul.f32.gmra.mxu1 %v265_v31 }
  0xd0   : > { %v311_v33 = vpop.f32.mrf.mxu0  ;;  %v323_v34 = vpop.f32.mrf.mxu1 }
  0xd1   : > { %v312_v35 = vadd.f32 %v673_v32, %v311_v33  ;;  %v324_v36 = vadd.f32 %v673_v32, %v323_v34 }
  0xd3   : > { %359 = vst [vmem:[%s1017_s28] sm:$0xff] %v312_v35 }
  0xd4   : > { %363 = vst [vmem:[%s1017_s28 + $0x20] sm:$0xff] %v324_v36  ;;  %v335_v37 = vpop.f32.mrf.mxu2  ;;  %v347_v38 = vpop.f32.mrf.mxu3 }
  0xd5   : > { %v336_v39 = vadd.f32 %v673_v32, %v335_v37  ;;  %v348_v40 = vadd.f32 %v673_v32, %v347_v38 }
  0xd7   : > { %367 = vst [vmem:[%s1017_s28 + $0x40] sm:$0xff] %v336_v39 }
  0xd8   : > { %371 = vst [vmem:[%s1017_s28 + $0x60] sm:$0xff] %v348_v40  ;;  %v314_v41 = vpop.f32.mrf.mxu0  ;;  %v326_v42 = vpop.f32.mrf.mxu1 }
  0xd9   : > { %v315_v43 = vadd.f32 %v673_v32, %v314_v41  ;;  %v327_v44 = vadd.f32 %v673_v32, %v326_v42 }
  0xdb   : > { %360 = vst [vmem:[%s1017_s28 + $0x8] sm:$0xff] %v315_v43 }
  0xdc   : > { %364 = vst [vmem:[%s1017_s28 + $0x28] sm:$0xff] %v327_v44  ;;  %v338_v45 = vpop.f32.mrf.mxu2  ;;  %v350_v46 = vpop.f32.mrf.mxu3 }
  0xdd   : > { %v339_v47 = vadd.f32 %v673_v32, %v338_v45  ;;  %v351_v48 = vadd.f32 %v673_v32, %v350_v46 }
  0xdf   : > { %368 = vst [vmem:[%s1017_s28 + $0x48] sm:$0xff] %v339_v47 }
  0xe0   : > { %372 = vst [vmem:[%s1017_s28 + $0x68] sm:$0xff] %v351_v48  ;;  %v317_v49 = vpop.f32.mrf.mxu0  ;;  %v329_v50 = vpop.f32.mrf.mxu1 }
  0xe1   : > { %v318_v51 = vadd.f32 %v673_v32, %v317_v49  ;;  %v330_v52 = vadd.f32 %v673_v32, %v329_v50 }
  0xe3   : > { %361 = vst [vmem:[%s1017_s28 + $0x10] sm:$0xff] %v318_v51 }
  0xe4   : > { %365 = vst [vmem:[%s1017_s28 + $0x30] sm:$0xff] %v330_v52  ;;  %v341_v53 = vpop.f32.mrf.mxu2  ;;  %v353_v54 = vpop.f32.mrf.mxu3 }
  0xe5   : > { %v342_v55 = vadd.f32 %v673_v32, %v341_v53  ;;  %v354_v56 = vadd.f32 %v673_v32, %v353_v54 }
  0xe7   : > { %369 = vst [vmem:[%s1017_s28 + $0x50] sm:$0xff] %v342_v55 }
  0xe8   : > { %373 = vst [vmem:[%s1017_s28 + $0x70] sm:$0xff] %v354_v56  ;;  %v320_v57 = vpop.f32.mrf.mxu0  ;;  %v332_v58 = vpop.f32.mrf.mxu1 }
  0xe9   : > { %v321_v59 = vadd.f32 %v673_v32, %v320_v57  ;;  %v333_v60 = vadd.f32 %v673_v32, %v332_v58 }
  0xeb   : > { %362 = vst [vmem:[%s1017_s28 + $0x18] sm:$0xff] %v321_v59 }
  0xec   : > { %366 = vst [vmem:[%s1017_s28 + $0x38] sm:$0xff] %v333_v60  ;;  %v344_v61 = vpop.f32.mrf.mxu2  ;;  %v356_v62 = vpop.f32.mrf.mxu3 }
  0xed   : > { %v345_v63 = vadd.f32 %v673_v32, %v344_v61  ;;  %v357_v0 = vadd.f32 %v673_v32, %v356_v62 }
  0xef   : > { %370 = vst [vmem:[%s1017_s28 + $0x58] sm:$0xff] %v345_v63 }
  0xf0   : > { %374 = vst [vmem:[%s1017_s28 + $0x78] sm:$0xff] %v357_v0 }
  0xf1   : > { %761 = shalt.err (!%p758_p13)
}
  0xf2   : > { %s841_s1 = smov 128   ;;  %s842_s22 = smov 8  }
  0xf3   : > { %586 = dma.vmem_to_hbm [thread:$0]  (%p946_p2), %s392_s20, 2048, %s394_s25, %s376_s29, %s841_s1, %s841_s1, %s842_s22  }
  0xf4 PF: > { %s1108_s23 = sld [smem:[#allocation11_spill]]  ;;  %p603_p0 = scmp.ge.s32.totalorder %s836_s19, 2 }
  0xf6   : > { %p597_p4 = pnand %p603_p0, %p918_p5 }
  0xf8   : > { %p598_p6 = pneg %p597_p4 }
  0xfa   : > { %s408_s4 = sand.u32 1, %s1108_s23  }
  0xfb   : > { %s409_s7 = scalar_lea.sflag [#allocation4], %s408_s4 }
  0xfc   : > { %803 = dma.done.wait (%p598_p6), %s409_s7, 2048  }
  0xfd   : > { %805 = vsyncadd (%p598_p6), %s409_s7, 4294965248  ;;  %s20_s19 = sadd.s32 1, %s836_s19   ;;  %s1110_s8 = sld [smem:[#allocation13_spill]] }
  0xfe   : > { %p17_p8 = scmp.ge.s32.totalorder %s20_s19, 8   ;;  %s1111_s9 = sld [smem:[#allocation15_spill]] }
  0xff   : > { %s1112_s12 = smov %s812_s13  ;;  %s1113_s13 = smov %s816_s14 }
 0x100   : > { %s1114_s14 = smov %s965_s5  ;;  %s1115_s15 = smov %s828_s17 }
 0x101   : > { %s1116_s16 = smov %s832_s18  ;;  %19 = sbr.rel (!%p17_p8) target bundleno = 10 (0xa), region = 85 }
 0x103   : > { %s1117_s17 = smov %s1110_s8 }
 0x104   : > { %s1118_s18 = smov %s1111_s9 }
 0x106   :  { %415 = vsyncpa [#allocation3], 1 }
 0x107   :  { %417 = vsyncpa [#allocation3 + $0x1], 1 }
 0x108   :  { %418 = vsyncpa [#allocation6], 1 }
 0x109   :  { %419 = vsyncpa [#allocation4], 1 }
 0x10a   :  { %421 = vsyncpa [#allocation4 + $0x1], 1 }

</bundles_post_ra>
